<compile_context>
chip_gen: v5e
topology: v5e:2x2
jax: 0.10.0
libtpu: 0.0.40
codegen_flags: <defaults>
</compile_context>

<pallas_src>
import functools

import jax
import jax.numpy as jnp
from jax import lax
from jax.experimental import pallas as pl
from jax.experimental.pallas import tpu as pltpu

_LANE = 128


def _round_up(x, m):
    return -(-x // m) * m


def _moments_kernel(pred_ref, targ_ref,
                    sx_ref, sy_ref, sxy_ref, sx2_ref, sy2_ref,
                    *, n_valid, tile_n, tiles_per_split, need_mask):
    """Grid: (parallel split over N, reduction over tiles within the split)."""
    k = pl.program_id(1)

    # Output blocks are revisited across the reduction axis -> they are the
    # per-split accumulators.  Zero them on the first reduction step.
    @pl.when(k == 0)
    def _init():
        for r in (sx_ref, sy_ref, sxy_ref, sx2_ref, sy2_ref):
            r[...] = jnp.zeros_like(r)

    # Stream in the native dtype; upcast per tile (free VPU work under DMA).
    p = pred_ref[...].astype(jnp.float32)
    t = targ_ref[...].astype(jnp.float32)

    if need_mask:
        # Mask lanes past the true sequence length.  This also zeroes the
        # duplicate (index-clamped) tiles of a ragged split, whose unclamped
        # start offset is >= n_valid.
        s = pl.program_id(0)
        start = (s * tiles_per_split + k) * tile_n
        lane = lax.broadcasted_iota(jnp.int32, p.shape, 1)
        valid = (start + lane) < n_valid
        p = jnp.where(valid, p, 0.0)
        t = jnp.where(valid, t, 0.0)

    sx_ref[...] += jnp.sum(p, axis=1, keepdims=True)
    sy_ref[...] += jnp.sum(t, axis=1, keepdims=True)
    sxy_ref[...] += jnp.sum(p * t, axis=1, keepdims=True)
    sx2_ref[...] += jnp.sum(p * p, axis=1, keepdims=True)
    sy2_ref[...] += jnp.sum(t * t, axis=1, keepdims=True)


def neg_pearson_loss(predictions, targets, *, tile_n=None, num_splits=2):
    """predictions, targets: (B, N) arrays. Returns the scalar NegPearson loss.

    Matches torch: global standardization (a no-op for Pearson) followed by
    the mean over batch of (1 - per-row Pearson correlation).
    """
    assert predictions.shape == targets.shape and predictions.ndim == 2
    b, n = predictions.shape

    # ---- generation-aware VMEM budget (v7x: 64 MiB, v5e/v6e: 128 MiB) ----
    try:
        vmem_cap = int(pltpu.get_tpu_info().vmem_capacity_bytes)
    except Exception:  # pragma: no cover - conservative fallback
        vmem_cap = 64 * 1024 * 1024
    vmem_limit = (vmem_cap * 3) // 4              # scoped VMEM limit
    buf_budget = vmem_limit - (4 << 20)           # headroom for outputs etc.

    def _col_bytes(x):
        isz = jnp.dtype(x.dtype).itemsize
        sublane = max(8, 32 // isz)               # sublane packing per dtype
        return _round_up(b, sublane) * isz        # bytes of one lane column

    # 2 inputs x 2 pipeline buffers, per lane column of the tile.
    bytes_per_col = 2 * (_col_bytes(predictions) + _col_bytes(targets))
    cap_cols = max(_LANE, (buf_budget // bytes_per_col) // _LANE * _LANE)

    n_aligned = _round_up(n, _LANE)
    if tile_n is None:
        tile_n = min(n_aligned, cap_cols)
        # If the sequence is long enough, make sure there are at least
        # `num_splits` tiles so the parallel axis has real work per core.
        if (num_splits > 1 and pl.cdiv(n, tile_n) < num_splits
                and n_aligned >= num_splits * _LANE):
            tile_n = min(tile_n, _round_up(n_aligned // num_splits, _LANE))
    else:
        tile_n = _round_up(max(tile_n, _LANE), _LANE)

    nt = pl.cdiv(n, tile_n)                       # total sequence tiles
    splits = max(1, min(num_splits, nt))          # parallel grid extent
    tiles_per_split = pl.cdiv(nt, splits)
    ragged = splits * tiles_per_split != nt
    need_mask = ragged or (n % tile_n != 0)
    last_block = nt - 1

    def data_map(s, k):
        g = s * tiles_per_split + k
        if ragged:
            g = jnp.minimum(g, last_block)        # keep the DMA in bounds
        return (0, g)

    def out_map(s, k):
        return (s, 0, 0)

    kernel = functools.partial(
        _moments_kernel,
        n_valid=n, tile_n=tile_n,
        tiles_per_split=tiles_per_split, need_mask=need_mask)

    moments = pl.pallas_call(
        kernel,
        out_shape=[jax.ShapeDtypeStruct((splits, b, 1), jnp.float32)] * 5,
        grid_spec=pltpu.PrefetchScalarGridSpec(
            num_scalar_prefetch=0,
            grid=(splits, tiles_per_split),
            in_specs=[
                pl.BlockSpec((b, tile_n), data_map),
                pl.BlockSpec((b, tile_n), data_map),
            ],
            out_specs=[pl.BlockSpec((None, b, 1), out_map)] * 5,
        ),
        compiler_params=pltpu.CompilerParams(
            dimension_semantics=("parallel", "arbitrary"),
            vmem_limit_bytes=vmem_limit,
        ),
    )(predictions, targets)

    # Tiny O(B) epilogue in plain JAX: combine per-split partial moments and
    # apply the Pearson formula exactly as the reference does.
    sx, sy, sxy, sx2, sy2 = (jnp.sum(m, axis=0)[:, 0] for m in moments)
    nf = jnp.float32(n)
    num = nf * sxy - sx * sy
    den = (nf * sx2 - sx * sx) * (nf * sy2 - sy * sy)
    pearson = num / jnp.sqrt(den)
    return jnp.mean(1.0 - pearson)


def _ref_neg_pearson(p, t):
    """Pure-JAX replica of the PyTorch reference (global norm + per-row Pearson)."""
    p = (p - jnp.mean(p)) / jnp.std(p, ddof=1)
    t = (t - jnp.mean(t)) / jnp.std(t, ddof=1)
    n = p.shape[1]
    sx = jnp.sum(p, axis=1)
    sy = jnp.sum(t, axis=1)
    sxy = jnp.sum(p * t, axis=1)
    sx2 = jnp.sum(p * p, axis=1)
    sy2 = jnp.sum(t * t, axis=1)
    pear = (n * sxy - sx * sy) / jnp.sqrt(
        (n * sx2 - sx ** 2) * (n * sy2 - sy ** 2))
    return jnp.mean(1.0 - pear)


if __name__ == "__main__":
    key = jax.random.PRNGKey(0)
    k1, k2, k3, k4, k5, k6 = jax.random.split(key, 6)

    # Case 1: small aligned shape -> single tile, single split, no masking.
    p1 = jax.random.normal(k1, (2, 128), dtype=jnp.float32)
    t1 = jax.random.normal(k2, (2, 128), dtype=jnp.float32)
    loss1 = neg_pearson_loss(p1, t1)
    jax.block_until_ready(loss1)
    ref1 = _ref_neg_pearson(p1, t1)
    assert jnp.allclose(loss1, ref1, atol=2e-5, rtol=2e-5), (loss1, ref1)

    # Case 2: unaligned B/N with a forced small tile -> parallel split,
    # ragged reduction grid (clamped block index) and lane masking of the
    # partial last tile.
    p2 = jax.random.normal(k3, (3, 300), dtype=jnp.float32)
    t2 = jax.random.normal(k4, (3, 300), dtype=jnp.float32)
    loss2 = neg_pearson_loss(p2, t2, tile_n=128)
    jax.block_until_ready(loss2)
    ref2 = _ref_neg_pearson(p2, t2)
    assert jnp.allclose(loss2, ref2, atol=2e-5, rtol=2e-5), (loss2, ref2)

    # Case 3: auto tile selection splits N across the parallel grid axis.
    p3 = jax.random.normal(k5, (8, 4096), dtype=jnp.float32)
    t3 = jax.random.normal(k6, (8, 4096), dtype=jnp.float32)
    loss3 = neg_pearson_loss(p3, t3)
    jax.block_until_ready(loss3)
    ref3 = _ref_neg_pearson(p3, t3)
    assert jnp.allclose(loss3, ref3, atol=2e-5, rtol=2e-5), (loss3, ref3)

    print("KERNEL_OK")
</pallas_src>

<mosaic_0001>
module attributes {stable_mosaic.version = 11 : i64} {
  func.func @_moments_kernel(%arg0: i32, %arg1: i32, %arg2: memref<2x128xf32, #tpu.memory_space<vmem>>, %arg3: memref<2x128xf32, #tpu.memory_space<vmem>>, %arg4: memref<1x2x1xf32, #tpu.memory_space<vmem>>, %arg5: memref<1x2x1xf32, #tpu.memory_space<vmem>>, %arg6: memref<1x2x1xf32, #tpu.memory_space<vmem>>, %arg7: memref<1x2x1xf32, #tpu.memory_space<vmem>>, %arg8: memref<1x2x1xf32, #tpu.memory_space<vmem>>) attributes {dimension_semantics = [#tpu.dimension_semantics<parallel>, #tpu.dimension_semantics<arbitrary>], iteration_bounds = array<i64: 1, 1>, scalar_prefetch = 0 : i64, scratch_operands = 0 : i64, tpu.core_type = #tpu.core_type<tc>, window_params = [{transform_indices = @transform_0, window_bounds = array<i64: 2, 128>}, {transform_indices = @transform_1, window_bounds = array<i64: 2, 128>}, {transform_indices = @transform_2, window_bounds = array<i64: 1, 2, 1>}, {transform_indices = @transform_3, window_bounds = array<i64: 1, 2, 1>}, {transform_indices = @transform_4, window_bounds = array<i64: 1, 2, 1>}, {transform_indices = @transform_5, window_bounds = array<i64: 1, 2, 1>}, {transform_indices = @transform_6, window_bounds = array<i64: 1, 2, 1>}]} {
    %c0_i32 = arith.constant 0 : i32
    %0 = arith.cmpi eq, %arg1, %c0_i32 : i32
    %1 = arith.extui %0 : i1 to i32
    %c0_i32_0 = arith.constant 0 : i32
    %2 = arith.cmpi ne, %1, %c0_i32_0 : i32
    scf.if %2 {
      %cst_38 = arith.constant 0.000000e+00 : f32
      %48 = vector.broadcast %cst_38 : f32 to vector<2x1xf32>
      %c0_39 = arith.constant 0 : index
      %c0_40 = arith.constant 0 : index
      %c0_41 = arith.constant 0 : index
      %49 = vector.load %arg4[%c0_39, %c0_40, %c0_41] : memref<1x2x1xf32, #tpu.memory_space<vmem>>, vector<1x2x1xf32>
      %50 = vector.shape_cast %49 : vector<1x2x1xf32> to vector<2x1xf32>
      %51 = vector.shape_cast %48 : vector<2x1xf32> to vector<1x2x1xf32>
      tpu.vector_store %arg4[%c0_39, %c0_40, %c0_41], %51 {strides = array<i32>} : memref<1x2x1xf32, #tpu.memory_space<vmem>>, vector<1x2x1xf32>,
      %cst_42 = arith.constant 0.000000e+00 : f32
      %52 = vector.broadcast %cst_42 : f32 to vector<2x1xf32>
      %c0_43 = arith.constant 0 : index
      %c0_44 = arith.constant 0 : index
      %c0_45 = arith.constant 0 : index
      %53 = vector.load %arg5[%c0_43, %c0_44, %c0_45] : memref<1x2x1xf32, #tpu.memory_space<vmem>>, vector<1x2x1xf32>
      %54 = vector.shape_cast %53 : vector<1x2x1xf32> to vector<2x1xf32>
      %55 = vector.shape_cast %52 : vector<2x1xf32> to vector<1x2x1xf32>
      tpu.vector_store %arg5[%c0_43, %c0_44, %c0_45], %55 {strides = array<i32>} : memref<1x2x1xf32, #tpu.memory_space<vmem>>, vector<1x2x1xf32>,
      %cst_46 = arith.constant 0.000000e+00 : f32
      %56 = vector.broadcast %cst_46 : f32 to vector<2x1xf32>
      %c0_47 = arith.constant 0 : index
      %c0_48 = arith.constant 0 : index
      %c0_49 = arith.constant 0 : index
      %57 = vector.load %arg6[%c0_47, %c0_48, %c0_49] : memref<1x2x1xf32, #tpu.memory_space<vmem>>, vector<1x2x1xf32>
      %58 = vector.shape_cast %57 : vector<1x2x1xf32> to vector<2x1xf32>
      %59 = vector.shape_cast %56 : vector<2x1xf32> to vector<1x2x1xf32>
      tpu.vector_store %arg6[%c0_47, %c0_48, %c0_49], %59 {strides = array<i32>} : memref<1x2x1xf32, #tpu.memory_space<vmem>>, vector<1x2x1xf32>,
      %cst_50 = arith.constant 0.000000e+00 : f32
      %60 = vector.broadcast %cst_50 : f32 to vector<2x1xf32>
      %c0_51 = arith.constant 0 : index
      %c0_52 = arith.constant 0 : index
      %c0_53 = arith.constant 0 : index
      %61 = vector.load %arg7[%c0_51, %c0_52, %c0_53] : memref<1x2x1xf32, #tpu.memory_space<vmem>>, vector<1x2x1xf32>
      %62 = vector.shape_cast %61 : vector<1x2x1xf32> to vector<2x1xf32>
      %63 = vector.shape_cast %60 : vector<2x1xf32> to vector<1x2x1xf32>
      tpu.vector_store %arg7[%c0_51, %c0_52, %c0_53], %63 {strides = array<i32>} : memref<1x2x1xf32, #tpu.memory_space<vmem>>, vector<1x2x1xf32>,
      %cst_54 = arith.constant 0.000000e+00 : f32
      %64 = vector.broadcast %cst_54 : f32 to vector<2x1xf32>
      %c0_55 = arith.constant 0 : index
      %c0_56 = arith.constant 0 : index
      %c0_57 = arith.constant 0 : index
      %65 = vector.load %arg8[%c0_55, %c0_56, %c0_57] : memref<1x2x1xf32, #tpu.memory_space<vmem>>, vector<1x2x1xf32>
      %66 = vector.shape_cast %65 : vector<1x2x1xf32> to vector<2x1xf32>
      %67 = vector.shape_cast %64 : vector<2x1xf32> to vector<1x2x1xf32>
      tpu.vector_store %arg8[%c0_55, %c0_56, %c0_57], %67 {strides = array<i32>} : memref<1x2x1xf32, #tpu.memory_space<vmem>>, vector<1x2x1xf32>,
    } else {
    }
    %c0 = arith.constant 0 : index
    %c0_1 = arith.constant 0 : index
    %3 = vector.load %arg2[%c0, %c0_1] : memref<2x128xf32, #tpu.memory_space<vmem>>, vector<2x128xf32>
    %c0_2 = arith.constant 0 : index
    %c0_3 = arith.constant 0 : index
    %4 = vector.load %arg3[%c0_2, %c0_3] : memref<2x128xf32, #tpu.memory_space<vmem>>, vector<2x128xf32>
    %c0_4 = arith.constant 0 : index
    %c0_5 = arith.constant 0 : index
    %c0_6 = arith.constant 0 : index
    %5 = vector.load %arg4[%c0_4, %c0_5, %c0_6] : memref<1x2x1xf32, #tpu.memory_space<vmem>>, vector<1x2x1xf32>
    %6 = vector.shape_cast %5 : vector<1x2x1xf32> to vector<2x1xf32>
    %cst = arith.constant dense<0.000000e+00> : vector<2xf32>
    %7 = vector.multi_reduction <add>, %3, %cst [1] : vector<2x128xf32> to vector<2xf32>
    %8 = vector.shape_cast %7 : vector<2xf32> to vector<2x1xf32>
    %9 = arith.addf %6, %8 : vector<2x1xf32>
    %c0_7 = arith.constant 0 : index
    %c0_8 = arith.constant 0 : index
    %c0_9 = arith.constant 0 : index
    %10 = vector.load %arg4[%c0_7, %c0_8, %c0_9] : memref<1x2x1xf32, #tpu.memory_space<vmem>>, vector<1x2x1xf32>
    %11 = vector.shape_cast %10 : vector<1x2x1xf32> to vector<2x1xf32>
    %12 = vector.shape_cast %9 : vector<2x1xf32> to vector<1x2x1xf32>
    tpu.vector_store %arg4[%c0_7, %c0_8, %c0_9], %12 {strides = array<i32>} : memref<1x2x1xf32, #tpu.memory_space<vmem>>, vector<1x2x1xf32>,
    %c0_10 = arith.constant 0 : index
    %c0_11 = arith.constant 0 : index
    %c0_12 = arith.constant 0 : index
    %13 = vector.load %arg5[%c0_10, %c0_11, %c0_12] : memref<1x2x1xf32, #tpu.memory_space<vmem>>, vector<1x2x1xf32>
    %14 = vector.shape_cast %13 : vector<1x2x1xf32> to vector<2x1xf32>
    %cst_13 = arith.constant dense<0.000000e+00> : vector<2xf32>
    %15 = vector.multi_reduction <add>, %4, %cst_13 [1] : vector<2x128xf32> to vector<2xf32>
    %16 = vector.shape_cast %15 : vector<2xf32> to vector<2x1xf32>
    %17 = arith.addf %14, %16 : vector<2x1xf32>
    %c0_14 = arith.constant 0 : index
    %c0_15 = arith.constant 0 : index
    %c0_16 = arith.constant 0 : index
    %18 = vector.load %arg5[%c0_14, %c0_15, %c0_16] : memref<1x2x1xf32, #tpu.memory_space<vmem>>, vector<1x2x1xf32>
    %19 = vector.shape_cast %18 : vector<1x2x1xf32> to vector<2x1xf32>
    %20 = vector.shape_cast %17 : vector<2x1xf32> to vector<1x2x1xf32>
    tpu.vector_store %arg5[%c0_14, %c0_15, %c0_16], %20 {strides = array<i32>} : memref<1x2x1xf32, #tpu.memory_space<vmem>>, vector<1x2x1xf32>,
    %c0_17 = arith.constant 0 : index
    %c0_18 = arith.constant 0 : index
    %c0_19 = arith.constant 0 : index
    %21 = vector.load %arg6[%c0_17, %c0_18, %c0_19] : memref<1x2x1xf32, #tpu.memory_space<vmem>>, vector<1x2x1xf32>
    %22 = vector.shape_cast %21 : vector<1x2x1xf32> to vector<2x1xf32>
    %23 = arith.mulf %3, %4 : vector<2x128xf32>
    %cst_20 = arith.constant dense<0.000000e+00> : vector<2xf32>
    %24 = vector.multi_reduction <add>, %23, %cst_20 [1] : vector<2x128xf32> to vector<2xf32>
    %25 = vector.shape_cast %24 : vector<2xf32> to vector<2x1xf32>
    %26 = arith.addf %22, %25 : vector<2x1xf32>
    %c0_21 = arith.constant 0 : index
    %c0_22 = arith.constant 0 : index
    %c0_23 = arith.constant 0 : index
    %27 = vector.load %arg6[%c0_21, %c0_22, %c0_23] : memref<1x2x1xf32, #tpu.memory_space<vmem>>, vector<1x2x1xf32>
    %28 = vector.shape_cast %27 : vector<1x2x1xf32> to vector<2x1xf32>
    %29 = vector.shape_cast %26 : vector<2x1xf32> to vector<1x2x1xf32>
    tpu.vector_store %arg6[%c0_21, %c0_22, %c0_23], %29 {strides = array<i32>} : memref<1x2x1xf32, #tpu.memory_space<vmem>>, vector<1x2x1xf32>,
    %c0_24 = arith.constant 0 : index
    %c0_25 = arith.constant 0 : index
    %c0_26 = arith.constant 0 : index
    %30 = vector.load %arg7[%c0_24, %c0_25, %c0_26] : memref<1x2x1xf32, #tpu.memory_space<vmem>>, vector<1x2x1xf32>
    %31 = vector.shape_cast %30 : vector<1x2x1xf32> to vector<2x1xf32>
    %32 = arith.mulf %3, %3 : vector<2x128xf32>
    %cst_27 = arith.constant dense<0.000000e+00> : vector<2xf32>
    %33 = vector.multi_reduction <add>, %32, %cst_27 [1] : vector<2x128xf32> to vector<2xf32>
    %34 = vector.shape_cast %33 : vector<2xf32> to vector<2x1xf32>
    %35 = arith.addf %31, %34 : vector<2x1xf32>
    %c0_28 = arith.constant 0 : index
    %c0_29 = arith.constant 0 : index
    %c0_30 = arith.constant 0 : index
    %36 = vector.load %arg7[%c0_28, %c0_29, %c0_30] : memref<1x2x1xf32, #tpu.memory_space<vmem>>, vector<1x2x1xf32>
    %37 = vector.shape_cast %36 : vector<1x2x1xf32> to vector<2x1xf32>
    %38 = vector.shape_cast %35 : vector<2x1xf32> to vector<1x2x1xf32>
    tpu.vector_store %arg7[%c0_28, %c0_29, %c0_30], %38 {strides = array<i32>} : memref<1x2x1xf32, #tpu.memory_space<vmem>>, vector<1x2x1xf32>,
    %c0_31 = arith.constant 0 : index
    %c0_32 = arith.constant 0 : index
    %c0_33 = arith.constant 0 : index
    %39 = vector.load %arg8[%c0_31, %c0_32, %c0_33] : memref<1x2x1xf32, #tpu.memory_space<vmem>>, vector<1x2x1xf32>
    %40 = vector.shape_cast %39 : vector<1x2x1xf32> to vector<2x1xf32>
    %41 = arith.mulf %4, %4 : vector<2x128xf32>
    %cst_34 = arith.constant dense<0.000000e+00> : vector<2xf32>
    %42 = vector.multi_reduction <add>, %41, %cst_34 [1] : vector<2x128xf32> to vector<2xf32>
    %43 = vector.shape_cast %42 : vector<2xf32> to vector<2x1xf32>
    %44 = arith.addf %40, %43 : vector<2x1xf32>
    %c0_35 = arith.constant 0 : index
    %c0_36 = arith.constant 0 : index
    %c0_37 = arith.constant 0 : index
    %45 = vector.load %arg8[%c0_35, %c0_36, %c0_37] : memref<1x2x1xf32, #tpu.memory_space<vmem>>, vector<1x2x1xf32>
    %46 = vector.shape_cast %45 : vector<1x2x1xf32> to vector<2x1xf32>
    %47 = vector.shape_cast %44 : vector<2x1xf32> to vector<1x2x1xf32>
    tpu.vector_store %arg8[%c0_35, %c0_36, %c0_37], %47 {strides = array<i32>} : memref<1x2x1xf32, #tpu.memory_space<vmem>>, vector<1x2x1xf32>,
    return
  }
  func.func @transform_0(%arg0: i32, %arg1: i32) -> (i32, i32) {
    %c1_i32 = arith.constant 1 : i32
    %0 = arith.muli %arg0, %c1_i32 : i32
    %1 = arith.addi %0, %arg1 : i32
    %c0_i32 = arith.constant 0 : i32
    %c0_i32_0 = arith.constant 0 : i32
    return %c0_i32, %1 : i32, i32
  }
  func.func @transform_1(%arg0: i32, %arg1: i32) -> (i32, i32) {
    %c1_i32 = arith.constant 1 : i32
    %0 = arith.muli %arg0, %c1_i32 : i32
    %1 = arith.addi %0, %arg1 : i32
    %c0_i32 = arith.constant 0 : i32
    %c0_i32_0 = arith.constant 0 : i32
    return %c0_i32, %1 : i32, i32
  }
  func.func @transform_2(%arg0: i32, %arg1: i32) -> (i32, i32, i32) {
    %c0_i32 = arith.constant 0 : i32
    %c0_i32_0 = arith.constant 0 : i32
    %c0_i32_1 = arith.constant 0 : i32
    return %arg0, %c0_i32, %c0_i32_0 : i32, i32, i32
  }
  func.func @transform_3(%arg0: i32, %arg1: i32) -> (i32, i32, i32) {
    %c0_i32 = arith.constant 0 : i32
    %c0_i32_0 = arith.constant 0 : i32
    %c0_i32_1 = arith.constant 0 : i32
    return %arg0, %c0_i32, %c0_i32_0 : i32, i32, i32
  }
  func.func @transform_4(%arg0: i32, %arg1: i32) -> (i32, i32, i32) {
    %c0_i32 = arith.constant 0 : i32
    %c0_i32_0 = arith.constant 0 : i32
    %c0_i32_1 = arith.constant 0 : i32
    return %arg0, %c0_i32, %c0_i32_0 : i32, i32, i32
  }
  func.func @transform_5(%arg0: i32, %arg1: i32) -> (i32, i32, i32) {
    %c0_i32 = arith.constant 0 : i32
    %c0_i32_0 = arith.constant 0 : i32
    %c0_i32_1 = arith.constant 0 : i32
    return %arg0, %c0_i32, %c0_i32_0 : i32, i32, i32
  }
  func.func @transform_6(%arg0: i32, %arg1: i32) -> (i32, i32, i32) {
    %c0_i32 = arith.constant 0 : i32
    %c0_i32_0 = arith.constant 0 : i32
    %c0_i32_1 = arith.constant 0 : i32
    return %arg0, %c0_i32, %c0_i32_0 : i32, i32, i32
  }
}

</mosaic_0001>

<bundles_post_ra>
// kernel: tpu_custom_call.1
= control target key start
LH: loop header
LB: loop body
LE: loop exit
PB: predicated region body
PF: predicated region fallthrough
CT: control target
= control target key end

     0   :  { %12 = vsyncpa [#allocation3], 0  ;;  %s275_s0 = inlined_call_operand.hbm [shape: f32[2,128], index: 0, kind: input, shape index: {}]   ;;  %s276_s1 = inlined_call_operand.hbm [shape: f32[2,128], index: 1, kind: input, shape index: {}]   ;;  %s277_s2 = inlined_call_operand.vmem [shape: f32[1,2,1], index: 2, kind: output, shape index: {0}]   ;;  %s278_s3 = inlined_call_operand.vmem [shape: f32[1,2,1], index: 3, kind: output, shape index: {1}]   ;;  %s279_s4 = inlined_call_operand.vmem [shape: f32[1,2,1], index: 4, kind: output, shape index: {2}]   ;;  %s280_s5 = inlined_call_operand.vmem [shape: f32[1,2,1], index: 5, kind: output, shape index: {3}]   ;;  %s281_s6 = inlined_call_operand.vmem [shape: f32[1,2,1], index: 6, kind: output, shape index: {4}]  }
   0x1   :  { %s22_s23 = sshll.u32 %s275_s0, 4  ;;  %s23_s23 = int_to_ptr.hbm [resolvable:$true] %s22_s23 }
   0x2   :  { %13 = vsyncpa [#allocation5], 0  ;;  %s176_s24 = smov [#allocation2]   ;;  %s36_s28 = sshll.u32 %s276_s1, 4  ;;  %s37_s28 = int_to_ptr.hbm [resolvable:$true] %s36_s28 }
   0x3   :  { %s24_s25 = sshll.u32 %s176_s24, 4  ;;  %s177_s29 = smov [#allocation4]   ;;  %s25_s25 = int_to_ptr.vmem [resolvable:$true] %s24_s25 }
   0x4   :  { %27 = dma.hbm_to_vmem [thread:$0]  %s23_s23, 32, %s25_s25, [#allocation3]  }
   0x5   :  { %s38_s30 = sshll.u32 %s177_s29, 4  ;;  %s39_s30 = int_to_ptr.vmem [resolvable:$true] %s38_s30 }
   0x6   :  { %41 = dma.hbm_to_vmem [thread:$0]  %s37_s28, 32, %s39_s30, [#allocation5]  }
   0x7   :  { %172 = dma.done.wait [#allocation3], 32  }
   0x8   :  { %173 = vsyncadd [#allocation3], 4294967264 }
   0x9   :  { %174 = dma.done.wait [#allocation5], 32  }
   0xa   :  { %175 = vsyncadd [#allocation5], 4294967264  ;;  %vm56_vm0 = vcmask 1024   ;;  %v178_v0 = vmov 0.0   ;;  %vm65_vm1 = vcmask 1041408  }
   0xb   :  { %59 = vst.msk [vmem:[%s279_s4] sm:$0x3] %vm56_vm0, %v178_v0  ;;  %v62_v1 = vld [vmem:[#allocation2] sm:$0x3]  ;;  %v63_v2 = vld [vmem:[#allocation4] sm:$0x3] }
   0xc   :  { %57 = vst.msk [vmem:[%s277_s2] sm:$0x3] %vm56_vm0, %v178_v0  ;;  %v79_v3 = vmul.f32 %v63_v2, %v62_v1  ;;  %v66_v4 = vsel %vm65_vm1, %v62_v1, 0.0  ;;  %v93_v5 = vmul.f32 %v63_v2, %v63_v2  ;;  %v86_v8 = vmul.f32 %v62_v1, %v62_v1 }
   0xd   :  { %58 = vst.msk [vmem:[%s278_s3] sm:$0x3] %vm56_vm0, %v178_v0  ;;  %67 = vadd.xlane.f32.xlu0 %v66_v4  ;;  %v73_v9 = vsel %vm65_vm1, %v63_v2, 0.0 }
   0xe   :  { %60 = vst.msk [vmem:[%s280_s5] sm:$0x3] %vm56_vm0, %v178_v0  ;;  %v80_v6 = vsel %vm65_vm1, %v79_v3, 0.0  ;;  %v94_v7 = vsel %vm65_vm1, %v93_v5, 0.0  ;;  %v87_v10 = vsel %vm65_vm1, %v86_v8, 0.0 }
   0xf   :  { %61 = vst.msk [vmem:[%s281_s6] sm:$0x3] %vm56_vm0, %v178_v0  ;;  %81 = vadd.xlane.f32.xlu1 %v80_v6  ;;  %95 = vadd.xlane.f32.xlu2 %v94_v7 }
  0x12   :  { %v78_v12 = vld [vmem:[%s279_s4] sm:$0x3] }
  0x13   :  { %v64_v11 = vld [vmem:[%s277_s2] sm:$0x3] }
  0x14   :  { %v72_v20 = vld [vmem:[%s278_s3] sm:$0x3] }
  0x15   :  { %74 = vadd.xlane.f32.xlu0 %v73_v9  ;;  %v85_v21 = vld [vmem:[%s280_s5] sm:$0x3] }
  0x16   :  { %v92_v14 = vld [vmem:[%s281_s6] sm:$0x3] }
  0x17   :  { %88 = vadd.xlane.f32.xlu1 %v87_v10 }
  0x80   :  { %v68_v13 = vpop.xlane.xlu0 %67 }
  0x81   :  { %v69_v15 = vadd.f32 %v68_v13, %v64_v11 }
  0x82   :  { %v82_v16 = vpop.xlane.xlu1 %81  ;;  %v96_v17 = vpop.xlane.xlu2 %95 }
  0x83   :  { %v83_v18 = vadd.f32 %v82_v16, %v78_v12  ;;  %71 = vst.msk [vmem:[%s277_s2] sm:$0x3] %vm56_vm0, %v69_v15  ;;  %v97_v19 = vadd.f32 %v96_v17, %v92_v14 }
  0x85   :  { %84 = vst.msk [vmem:[%s279_s4] sm:$0x3] %vm56_vm0, %v83_v18 }
  0x86   :  { %98 = vst.msk [vmem:[%s281_s6] sm:$0x3] %vm56_vm0, %v97_v19 }
  0x88   :  { %v75_v22 = vpop.xlane.xlu0 %74 }
  0x89   :  { %v76_v23 = vadd.f32 %v75_v22, %v72_v20 }
  0x8a   :  { %v89_v24 = vpop.xlane.xlu1 %88 }
  0x8b   :  { %v90_v25 = vadd.f32 %v89_v24, %v85_v21  ;;  %77 = vst.msk [vmem:[%s278_s3] sm:$0x3] %vm56_vm0, %v76_v23 }
  0x8d   :  { %91 = vst.msk [vmem:[%s280_s5] sm:$0x3] %vm56_vm0, %v90_v25 }
  0x8e   :  { %119 = vsyncpa [#allocation3], 1 }
  0x8f   :  { %120 = vsyncpa [#allocation5], 1 }

</bundles_post_ra>
